<compile_context>
chip_gen: v5e
topology: v5e:2x2
jax: 0.10.0
libtpu: 0.0.40
codegen_flags: <defaults>
</compile_context>

<pallas_src>
import functools

import jax
import jax.numpy as jnp
from jax.experimental import pallas as pl
from jax.experimental.pallas import tpu as pltpu

_EPS = 1e-5  # nn.GroupNorm default eps
_VMEM_LIMIT = 32 * 1024 * 1024  # explicit, safe on v5e/v6e/v7x


def _choose_lt(L, max_lt=512):
    """Largest L tile (multiple of 128, <= max_lt) dividing L; else full L."""
    if L % 128 != 0:
        return L
    for cand in (max_lt, 384, 256, 128):
        if cand % 128 == 0 and cand <= L and L % cand == 0:
            return cand
    return L


# --------------------------------------------------------------------------- #
# Kernel 1: per-sample stats -> (scale, shift) vectors, single pass over x.
# --------------------------------------------------------------------------- #
def _stats_kernel(x_ref, gamma_ref, beta_ref, scale_ref, shift_ref,
                  sum_sc, sq_sc, *, n_elems):
    # x_ref: (C, Lt) tile of sample b; gamma/beta: (C, 1); outputs (C, 1).
    l = pl.program_id(1)

    @pl.when(l == 0)
    def _():
        sum_sc[...] = jnp.zeros_like(sum_sc)
        sq_sc[...] = jnp.zeros_like(sq_sc)

    x = x_ref[...].astype(jnp.float32)                      # promote only in-reg
    sum_sc[...] += jnp.sum(x, axis=(0, 1), keepdims=True)   # (1, 1)
    sq_sc[...] += jnp.sum(x * x, axis=(0, 1), keepdims=True)

    @pl.when(l == pl.num_programs(1) - 1)
    def _():
        inv_n = 1.0 / n_elems
        mean = sum_sc[...] * inv_n                          # (1, 1)
        var = sq_sc[...] * inv_n - mean * mean              # E[x^2] - E[x]^2 (f32)
        inv = jax.lax.rsqrt(jnp.maximum(var, 0.0) + _EPS)
        scale = gamma_ref[...] * inv                        # (C, 1)
        shift = beta_ref[...] - mean * scale                # (C, 1)
        scale_ref[...] = scale
        shift_ref[...] = shift


def _compute_scale_shift(x, gamma, beta, lt):
    B, C, L = x.shape
    n_lt = L // lt
    gamma2d = gamma.reshape(C, 1).astype(jnp.float32)
    beta2d = beta.reshape(C, 1).astype(jnp.float32)

    return pl.pallas_call(
        functools.partial(_stats_kernel, n_elems=float(C * L)),
        out_shape=(jax.ShapeDtypeStruct((B, C, 1), jnp.float32),
                   jax.ShapeDtypeStruct((B, C, 1), jnp.float32)),
        grid_spec=pltpu.PrefetchScalarGridSpec(
            num_scalar_prefetch=0,
            grid=(B, n_lt),
            in_specs=[
                pl.BlockSpec((None, C, lt), lambda b, l: (b, 0, l)),
                pl.BlockSpec((C, 1), lambda b, l: (0, 0)),
                pl.BlockSpec((C, 1), lambda b, l: (0, 0)),
            ],
            out_specs=[
                pl.BlockSpec((None, C, 1), lambda b, l: (b, 0, 0)),
                pl.BlockSpec((None, C, 1), lambda b, l: (b, 0, 0)),
            ],
            scratch_shapes=[pltpu.VMEM((1, 1), jnp.float32),
                            pltpu.VMEM((1, 1), jnp.float32)],
        ),
        compiler_params=pltpu.CompilerParams(
            dimension_semantics=("parallel", "arbitrary"),
            vmem_limit_bytes=_VMEM_LIMIT,
        ),
    )(x, gamma2d, beta2d)


# --------------------------------------------------------------------------- #
# Kernel 2a: normalize + fused channel-mixing matmul (fn == 1x1 conv).
# --------------------------------------------------------------------------- #
def _norm_matmul_kernel(scale_ref, shift_ref, x_ref, w_ref, o_ref):
    # x_ref: (C, Lt); scale/shift: (C, 1); w: (C_out, C); o: (C_out, Lt)
    xn = x_ref[...].astype(jnp.float32) * scale_ref[...] + shift_ref[...]
    y = jnp.dot(w_ref[...], xn,
                preferred_element_type=jnp.float32,
                precision=jax.lax.Precision.HIGHEST)
    o_ref[...] = y.astype(o_ref.dtype)


# Kernel 2b: normalize only (generic fn applied outside as plain JAX).
def _norm_kernel(scale_ref, shift_ref, x_ref, o_ref):
    xn = x_ref[...].astype(jnp.float32) * scale_ref[...] + shift_ref[...]
    o_ref[...] = xn.astype(o_ref.dtype)


def prenorm_fused(x, gamma, beta, w):
    """GroupNorm(1, C) followed by a fused 1x1 conv (channel mix) w: (C_out, C)."""
    B, C, L = x.shape
    C_out = w.shape[0]
    lt = _choose_lt(L)
    n_lt = L // lt

    scale, shift = _compute_scale_shift(x, gamma, beta, lt)

    return pl.pallas_call(
        _norm_matmul_kernel,
        out_shape=jax.ShapeDtypeStruct((B, C_out, L), x.dtype),
        grid_spec=pltpu.PrefetchScalarGridSpec(
            num_scalar_prefetch=0,
            grid=(B, n_lt),
            in_specs=[
                pl.BlockSpec((None, C, 1), lambda b, l: (b, 0, 0)),
                pl.BlockSpec((None, C, 1), lambda b, l: (b, 0, 0)),
                pl.BlockSpec((None, C, lt), lambda b, l: (b, 0, l)),
                pl.BlockSpec((C_out, C), lambda b, l: (0, 0)),
            ],
            out_specs=pl.BlockSpec((None, C_out, lt), lambda b, l: (b, 0, l)),
        ),
        compiler_params=pltpu.CompilerParams(
            dimension_semantics=("parallel", "parallel"),
            vmem_limit_bytes=_VMEM_LIMIT,
        ),
    )(scale, shift, x, w.astype(jnp.float32))


def groupnorm1(x, gamma, beta):
    """GroupNorm(num_groups=1, num_channels=C) on x of shape (B, C, L)."""
    B, C, L = x.shape
    lt = _choose_lt(L)
    n_lt = L // lt

    scale, shift = _compute_scale_shift(x, gamma, beta, lt)

    return pl.pallas_call(
        _norm_kernel,
        out_shape=jax.ShapeDtypeStruct((B, C, L), x.dtype),
        grid_spec=pltpu.PrefetchScalarGridSpec(
            num_scalar_prefetch=0,
            grid=(B, n_lt),
            in_specs=[
                pl.BlockSpec((None, C, 1), lambda b, l: (b, 0, 0)),
                pl.BlockSpec((None, C, 1), lambda b, l: (b, 0, 0)),
                pl.BlockSpec((None, C, lt), lambda b, l: (b, 0, l)),
            ],
            out_specs=pl.BlockSpec((None, C, lt), lambda b, l: (b, 0, l)),
        ),
        compiler_params=pltpu.CompilerParams(
            dimension_semantics=("parallel", "parallel"),
            vmem_limit_bytes=_VMEM_LIMIT,
        ),
    )(scale, shift, x)


class PreNorm:
    """JAX/Pallas equivalent of the PyTorch PreNorm(dim, fn) module."""

    def __init__(self, dim, fn, key, *, fn_weight=None):
        self.fn = fn
        # When fn is a channel-mixing (1x1 conv) with weight (dim_out, dim),
        # pass it as fn_weight so it is fused into the Pallas kernel.
        self.fn_weight = fn_weight
        k1, k2 = jax.random.split(key)
        # nn.GroupNorm default init is weight=1, bias=0; perturb so the affine
        # path is actually exercised.
        self.gamma = 1.0 + 0.1 * jax.random.normal(k1, (dim,), dtype=jnp.float32)
        self.beta = 0.1 * jax.random.normal(k2, (dim,), dtype=jnp.float32)

    def __call__(self, x):
        if self.fn_weight is not None:
            return prenorm_fused(x, self.gamma, self.beta, self.fn_weight)
        # TODO(synk): arbitrary wrapped fn modules (attention, MLP blocks, ...)
        # are applied as plain JAX after the Pallas normalization kernel.
        return self.fn(groupnorm1(x, self.gamma, self.beta))


def _groupnorm1_ref(x, gamma, beta):
    """Pure-JAX reference matching nn.GroupNorm(1, C)."""
    xf = x.astype(jnp.float32)
    mean = jnp.mean(xf, axis=(1, 2), keepdims=True)
    var = jnp.mean((xf - mean) ** 2, axis=(1, 2), keepdims=True)
    xn = (xf - mean) / jnp.sqrt(var + _EPS)
    return (xn * gamma[None, :, None] + beta[None, :, None]).astype(x.dtype)


if __name__ == "__main__":
    key = jax.random.PRNGKey(0)
    k_x, k_p, k_w = jax.random.split(key, 3)

    B, C, L = 2, 8, 1024  # small; L exercises multi-tile stats accumulation
    x = jax.random.normal(k_x, (B, C, L), dtype=jnp.float32)

    # Example `fn`: deterministic 1x1 conv over channels (the common PreNorm
    # wrappee in this Unet), fused into the kernel via fn_weight.
    w_fn = 0.05 * jax.random.normal(k_w, (C, C), dtype=jnp.float32)
    fn = lambda h: jnp.einsum("oc,bcl->bol", w_fn, h,
                              precision=jax.lax.Precision.HIGHEST)

    prenorm = PreNorm(C, fn, k_p, fn_weight=w_fn)
    out = jax.block_until_ready(prenorm(x))

    ref = fn(_groupnorm1_ref(x, prenorm.gamma, prenorm.beta))
    assert out.shape == ref.shape
    err = float(jnp.max(jnp.abs(out - ref)))
    assert jnp.allclose(out, ref, atol=2e-3, rtol=2e-3), err

    # Also exercise the generic (non-fused) path.
    prenorm_generic = PreNorm(C, fn, k_p)
    out2 = jax.block_until_ready(prenorm_generic(x))
    err2 = float(jnp.max(jnp.abs(out2 - ref)))
    assert jnp.allclose(out2, ref, atol=2e-3, rtol=2e-3), err2

    print("KERNEL_OK")
</pallas_src>

<mosaic_0001>
module attributes {stable_mosaic.version = 11 : i64} {
  func.func @_stats_kernel(%arg0: i32, %arg1: i32, %arg2: memref<1x8x512xf32, #tpu.memory_space<vmem>>, %arg3: memref<8x1xf32, #tpu.memory_space<vmem>>, %arg4: memref<8x1xf32, #tpu.memory_space<vmem>>, %arg5: memref<1x8x1xf32, #tpu.memory_space<vmem>>, %arg6: memref<1x8x1xf32, #tpu.memory_space<vmem>>, %arg7: memref<1x1xf32, #tpu.memory_space<vmem>>, %arg8: memref<1x1xf32, #tpu.memory_space<vmem>>) attributes {dimension_semantics = [#tpu.dimension_semantics<parallel>, #tpu.dimension_semantics<arbitrary>], iteration_bounds = array<i64: 2, 2>, scalar_prefetch = 0 : i64, scratch_operands = 2 : i64, tpu.core_type = #tpu.core_type<tc>, window_params = [{transform_indices = @transform_0, window_bounds = array<i64: 1, 8, 512>}, {pipeline_mode = #tpu.pipeline_mode<synchronous>, transform_indices = @transform_1, window_bounds = array<i64: 8, 1>}, {pipeline_mode = #tpu.pipeline_mode<synchronous>, transform_indices = @transform_2, window_bounds = array<i64: 8, 1>}, {transform_indices = @transform_3, window_bounds = array<i64: 1, 8, 1>}, {transform_indices = @transform_4, window_bounds = array<i64: 1, 8, 1>}]} {
    %c0_i32 = arith.constant 0 : i32
    %0 = arith.cmpi eq, %arg1, %c0_i32 : i32
    %1 = arith.extui %0 : i1 to i32
    %c0_i32_0 = arith.constant 0 : i32
    %2 = arith.cmpi ne, %1, %c0_i32_0 : i32
    scf.if %2 {
      %cst_13 = arith.constant 0.000000e+00 : f32
      %25 = vector.broadcast %cst_13 : f32 to vector<1x1xf32>
      %c0_14 = arith.constant 0 : index
      %c0_15 = arith.constant 0 : index
      %26 = vector.load %arg7[%c0_14, %c0_15] : memref<1x1xf32, #tpu.memory_space<vmem>>, vector<1x1xf32>
      tpu.vector_store %arg7[%c0_14, %c0_15], %25 {strides = array<i32>} : memref<1x1xf32, #tpu.memory_space<vmem>>, vector<1x1xf32>,
      %cst_16 = arith.constant 0.000000e+00 : f32
      %27 = vector.broadcast %cst_16 : f32 to vector<1x1xf32>
      %c0_17 = arith.constant 0 : index
      %c0_18 = arith.constant 0 : index
      %28 = vector.load %arg8[%c0_17, %c0_18] : memref<1x1xf32, #tpu.memory_space<vmem>>, vector<1x1xf32>
      tpu.vector_store %arg8[%c0_17, %c0_18], %27 {strides = array<i32>} : memref<1x1xf32, #tpu.memory_space<vmem>>, vector<1x1xf32>,
    } else {
    }
    %c0 = arith.constant 0 : index
    %c0_1 = arith.constant 0 : index
    %c0_2 = arith.constant 0 : index
    %3 = vector.load %arg2[%c0, %c0_1, %c0_2] : memref<1x8x512xf32, #tpu.memory_space<vmem>>, vector<1x8x512xf32>
    %4 = vector.shape_cast %3 : vector<1x8x512xf32> to vector<8x512xf32>
    %c0_3 = arith.constant 0 : index
    %c0_4 = arith.constant 0 : index
    %5 = vector.load %arg7[%c0_3, %c0_4] : memref<1x1xf32, #tpu.memory_space<vmem>>, vector<1x1xf32>
    %6 = vector.shape_cast %4 : vector<8x512xf32> to vector<1x8x512xf32>
    %cst = arith.constant dense<0.000000e+00> : vector<1xf32>
    %7 = vector.multi_reduction <add>, %6, %cst [1, 2] : vector<1x8x512xf32> to vector<1xf32>
    %8 = vector.shape_cast %7 : vector<1xf32> to vector<1x1x1xf32>
    %9 = vector.extract %8[0, 0, 0] : f32 from vector<1x1x1xf32>
    %10 = vector.broadcast %9 : f32 to vector<1x1xf32>
    %11 = arith.addf %5, %10 : vector<1x1xf32>
    %c0_5 = arith.constant 0 : index
    %c0_6 = arith.constant 0 : index
    %12 = vector.load %arg7[%c0_5, %c0_6] : memref<1x1xf32, #tpu.memory_space<vmem>>, vector<1x1xf32>
    tpu.vector_store %arg7[%c0_5, %c0_6], %11 {strides = array<i32>} : memref<1x1xf32, #tpu.memory_space<vmem>>, vector<1x1xf32>,
    %c0_7 = arith.constant 0 : index
    %c0_8 = arith.constant 0 : index
    %13 = vector.load %arg8[%c0_7, %c0_8] : memref<1x1xf32, #tpu.memory_space<vmem>>, vector<1x1xf32>
    %14 = arith.mulf %4, %4 : vector<8x512xf32>
    %15 = vector.shape_cast %14 : vector<8x512xf32> to vector<1x8x512xf32>
    %cst_9 = arith.constant dense<0.000000e+00> : vector<1xf32>
    %16 = vector.multi_reduction <add>, %15, %cst_9 [1, 2] : vector<1x8x512xf32> to vector<1xf32>
    %17 = vector.shape_cast %16 : vector<1xf32> to vector<1x1x1xf32>
    %18 = vector.extract %17[0, 0, 0] : f32 from vector<1x1x1xf32>
    %19 = vector.broadcast %18 : f32 to vector<1x1xf32>
    %20 = arith.addf %13, %19 : vector<1x1xf32>
    %c0_10 = arith.constant 0 : index
    %c0_11 = arith.constant 0 : index
    %21 = vector.load %arg8[%c0_10, %c0_11] : memref<1x1xf32, #tpu.memory_space<vmem>>, vector<1x1xf32>
    tpu.vector_store %arg8[%c0_10, %c0_11], %20 {strides = array<i32>} : memref<1x1xf32, #tpu.memory_space<vmem>>, vector<1x1xf32>,
    %c1_i32 = arith.constant 1 : i32
    %22 = arith.cmpi eq, %arg1, %c1_i32 : i32
    %23 = arith.extui %22 : i1 to i32
    %c0_i32_12 = arith.constant 0 : i32
    %24 = arith.cmpi ne, %23, %c0_i32_12 : i32
    scf.if %24 {
      %c0_13 = arith.constant 0 : index
      %c0_14 = arith.constant 0 : index
      %25 = vector.load %arg7[%c0_13, %c0_14] : memref<1x1xf32, #tpu.memory_space<vmem>>, vector<1x1xf32>
      %cst_15 = arith.constant 1.22070313E-4 : f32
      %26 = vector.broadcast %cst_15 : f32 to vector<1x1xf32>
      %27 = arith.mulf %25, %26 : vector<1x1xf32>
      %c0_16 = arith.constant 0 : index
      %c0_17 = arith.constant 0 : index
      %28 = vector.load %arg8[%c0_16, %c0_17] : memref<1x1xf32, #tpu.memory_space<vmem>>, vector<1x1xf32>
      %cst_18 = arith.constant 1.22070313E-4 : f32
      %29 = vector.broadcast %cst_18 : f32 to vector<1x1xf32>
      %30 = arith.mulf %28, %29 : vector<1x1xf32>
      %31 = arith.mulf %27, %27 : vector<1x1xf32>
      %32 = arith.subf %30, %31 : vector<1x1xf32>
      %cst_19 = arith.constant 0.000000e+00 : f32
      %33 = vector.broadcast %cst_19 : f32 to vector<1x1xf32>
      %34 = arith.maximumf %32, %33 : vector<1x1xf32>
      %cst_20 = arith.constant 9.99999974E-6 : f32
      %35 = vector.broadcast %cst_20 : f32 to vector<1x1xf32>
      %36 = arith.addf %34, %35 : vector<1x1xf32>
      %37 = math.rsqrt %36 : vector<1x1xf32>
      %c0_21 = arith.constant 0 : index
      %c0_22 = arith.constant 0 : index
      %38 = vector.load %arg3[%c0_21, %c0_22] : memref<8x1xf32, #tpu.memory_space<vmem>>, vector<8x1xf32>
      %39 = vector.broadcast %37 : vector<1x1xf32> to vector<8x1xf32>
      %40 = arith.mulf %38, %39 : vector<8x1xf32>
      %c0_23 = arith.constant 0 : index
      %c0_24 = arith.constant 0 : index
      %41 = vector.load %arg4[%c0_23, %c0_24] : memref<8x1xf32, #tpu.memory_space<vmem>>, vector<8x1xf32>
      %42 = vector.broadcast %27 : vector<1x1xf32> to vector<8x1xf32>
      %43 = arith.mulf %42, %40 : vector<8x1xf32>
      %44 = arith.subf %41, %43 : vector<8x1xf32>
      %c0_25 = arith.constant 0 : index
      %c0_26 = arith.constant 0 : index
      %c0_27 = arith.constant 0 : index
      %45 = vector.load %arg5[%c0_25, %c0_26, %c0_27] : memref<1x8x1xf32, #tpu.memory_space<vmem>>, vector<1x8x1xf32>
      %46 = vector.shape_cast %45 : vector<1x8x1xf32> to vector<8x1xf32>
      %47 = vector.shape_cast %40 : vector<8x1xf32> to vector<1x8x1xf32>
      tpu.vector_store %arg5[%c0_25, %c0_26, %c0_27], %47 {strides = array<i32>} : memref<1x8x1xf32, #tpu.memory_space<vmem>>, vector<1x8x1xf32>,
      %c0_28 = arith.constant 0 : index
      %c0_29 = arith.constant 0 : index
      %c0_30 = arith.constant 0 : index
      %48 = vector.load %arg6[%c0_28, %c0_29, %c0_30] : memref<1x8x1xf32, #tpu.memory_space<vmem>>, vector<1x8x1xf32>
      %49 = vector.shape_cast %48 : vector<1x8x1xf32> to vector<8x1xf32>
      %50 = vector.shape_cast %44 : vector<8x1xf32> to vector<1x8x1xf32>
      tpu.vector_store %arg6[%c0_28, %c0_29, %c0_30], %50 {strides = array<i32>} : memref<1x8x1xf32, #tpu.memory_space<vmem>>, vector<1x8x1xf32>,
    } else {
    }
    return
  }
  func.func @transform_0(%arg0: i32, %arg1: i32) -> (i32, i32, i32) {
    %c0_i32 = arith.constant 0 : i32
    %c0_i32_0 = arith.constant 0 : i32
    return %arg0, %c0_i32, %arg1 : i32, i32, i32
  }
  func.func @transform_1(%arg0: i32, %arg1: i32) -> (i32, i32) {
    %c0_i32 = arith.constant 0 : i32
    %c0_i32_0 = arith.constant 0 : i32
    %c0_i32_1 = arith.constant 0 : i32
    return %c0_i32, %c0_i32_0 : i32, i32
  }
  func.func @transform_2(%arg0: i32, %arg1: i32) -> (i32, i32) {
    %c0_i32 = arith.constant 0 : i32
    %c0_i32_0 = arith.constant 0 : i32
    %c0_i32_1 = arith.constant 0 : i32
    return %c0_i32, %c0_i32_0 : i32, i32
  }
  func.func @transform_3(%arg0: i32, %arg1: i32) -> (i32, i32, i32) {
    %c0_i32 = arith.constant 0 : i32
    %c0_i32_0 = arith.constant 0 : i32
    %c0_i32_1 = arith.constant 0 : i32
    return %arg0, %c0_i32, %c0_i32_0 : i32, i32, i32
  }
  func.func @transform_4(%arg0: i32, %arg1: i32) -> (i32, i32, i32) {
    %c0_i32 = arith.constant 0 : i32
    %c0_i32_0 = arith.constant 0 : i32
    %c0_i32_1 = arith.constant 0 : i32
    return %arg0, %c0_i32, %c0_i32_0 : i32, i32, i32
  }
}

</mosaic_0001>

<bundles_post_ra>
// kernel: tpu_custom_call.1
= control target key start
LH: loop header
LB: loop body
LE: loop exit
PB: predicated region body
PF: predicated region fallthrough
CT: control target
= control target key end

     0   :  { %10 = vsyncpa [#allocation5], 0  ;;  %s786_s0 = inlined_call_operand.hbm [shape: f32[2,8,1024], index: 0, kind: input, shape index: {}]   ;;  %s787_s1 = inlined_call_operand.vmem [shape: f32[8,1], index: 1, kind: input, shape index: {}]   ;;  %s788_s2 = inlined_call_operand.vmem [shape: f32[8,1], index: 2, kind: input, shape index: {}]   ;;  %s789_s3 = inlined_call_operand.vmem [shape: f32[2,8,1], index: 3, kind: output, shape index: {0}]   ;;  %s790_s4 = inlined_call_operand.vmem [shape: f32[2,8,1], index: 4, kind: output, shape index: {1}]  }
   0x1   :  { %12 = vsyncpa [#allocation5 + $0x1], 0  ;;  %s656_s15 = smov 0   ;;  %s658_s16 = smov 0  }
   0x2   :  { %s660_s17 = smov 0   ;;  %s662_s18 = smov 0  }
   0x3   :  { %s664_s19 = smov 0   ;;  %s666_s20 = smov 0  }
   0x4   :  { %s668_s21 = smov 0   ;;  %s670_s22 = smov 0  }
   0x5 LB: > { %s438_s23 = sadd.s32 4294967295, %s628_s22   ;;  %s27_s24 = sadd.s32 1, %s620_s20  ;;  %s628_s22 = sphi %s670_s22, %s18_s22   ;;  %s624_s21 = sphi %s668_s21, %s802_s21   ;;  %s620_s20 = sphi %s666_s20, %s801_s20   ;;  %s616_s19 = sphi %s664_s19, %s800_s19   ;;  %s612_s18 = sphi %s662_s18, %s799_s18   ;;  %s608_s17 = sphi %s660_s17, %s798_s17   ;;  %s604_s16 = sphi %s658_s16, %s797_s16   ;;  %s600_s15 = sphi %s656_s15, %s796_s15  }
   0x6   : > { %p28_p0 = scmp.ge.s32.totalorder %s27_s24, 2  ;;  %s30_s25 = sadd.s32 1, %s624_s21 }
   0x7   : > { %s39_s26 = sadd.s32 1, %s608_s17  ;;  %p46_p1 = scmp.ne.s32.totalorder %s608_s17, %s604_s16 }
   0x8   : > { %s804_s24 = smov (%p28_p0, %s27_s24), 0  ;;  %s806_s25 = smov (!%p28_p0, %s30_s25), %s624_s21 }
   0x9   : > { %s35_s27 = ssub.s32 %s620_s20, %s804_s24  ;;  %p47_p2 = scmp.eq.s32.totalorder %s628_s22, 0 }
   0xa   : > { %p32_p3 = scmp.ge.s32.totalorder %s806_s25, 2  ;;  %p52_p4 = scmp.ne.s32.totalorder %s604_s16, %s600_s15 }
   0xb   : > { %p707_p5 = por %p47_p2, %p46_p1  ;;  %p53_p6 = scmp.eq.s32.totalorder %s438_s23, 0 }
   0xc   : > { %s808_s25 = smov (%p32_p3, %s806_s25), 0  ;;  %p464_p8 = scmp.lt.s32.totalorder %s628_s22, 4 }
   0xd   : > { %793 = sst [smem:[#allocation7_spill]] %s808_s25  ;;  %p713_p7 = por %p53_p6, %p52_p4 }
   0xe   : > { %s34_s30 = ssub.s32 %s624_s21, %s808_s25  ;;  %s176_s6 = sand.u32 1, %s608_s17  }
   0xf   : > { %s36_s5 = sor.u32 %s35_s27, %s34_s30  ;;  %s442_s7 = sshll.u32 %s176_s6, 5 }
  0x10   : > { %p37_p9 = scmp.eq.s32.totalorder %s36_s5, 0  ;;  %s443_s8 = sshll.u32 %s620_s20, 2 }
  0x11   : > { %s444_s10 = sshll.u32 %s624_s21, 3  ;;  %s180_s12 = scalar_lea.vmem [#allocation4], %s442_s7 }
  0x12   : > { %s723_s9 = scalar_select %p37_p9, %s608_s17, %s39_s26  }
  0x13   : > { %s185_s11 = sadd.s32 %s444_s10, %s443_s8  ;;  %s191_s13 = sshll.u32 %s180_s12, 4  ;;  %s192_s13 = int_to_ptr.vmem [resolvable:$true] %s191_s13 }
  0x14   : > { %s445_s14 = sshll.u32 %s185_s11, 3  ;;  %p461_p10 = pnand %p464_p8, %p707_p5 }
  0x15   : > { %s187_s25 = scalar_lea.hbm %s786_s0, %s445_s14  ;;  %p446_p11 = scmp.ge.s32.totalorder %s628_s22, 1 }
  0x16   : > { %s189_s27 = sshll.u32 %s187_s25, 4  ;;  %s177_s30 = scalar_lea.sflag [#allocation5], %s176_s6  ;;  %s190_s27 = int_to_ptr.hbm [resolvable:$true] %s189_s27 }
  0x17   : > { %463 = dma.hbm_to_vmem [thread:$0]  (!%p461_p10), %s190_s27, 512, %s192_s13, %s177_s30  }
  0x18   : > { %p196_p12 = scmp.lt.s32.totalorder %s628_s22, 5 }
  0x1a   : > { %p197_p13 = pnand %p446_p11, %p196_p12 }
  0x1b   : > { %s202_s26 = sand.u32 (!%p197_p13), 1, %s604_s16  }
  0x1c   : > { %200 = sbr.rel (%p197_p13) target bundleno = 283 (0x11b), region = 32  ;;  %s447_s5 = sshll.u32 (!%p197_p13), %s202_s26, 5 }
  0x1d   : > { %s203_s7 = scalar_lea.sflag (!%p197_p13), [#allocation5], %s202_s26  ;;  %s206_s8 = scalar_lea.vmem (!%p197_p13), [#allocation4], %s447_s5 }
  0x21   : > { %595 = dma.done.wait (%p713_p7), %s203_s7, 512  }
  0x22   : > { %597 = vsyncadd (%p713_p7), %s203_s7, 4294966784  ;;  %p236_p0 = scmp.lt.s32.totalorder %s616_s19, 1  ;;  %p450_p1 = scmp.ne.s32.totalorder %s612_s18, 0 }
  0x24   : > { %s810_s19 = smov (!%p236_p0, %s616_s19), 1  ;;  %247 = sbr.rel (%p450_p1) target bundleno = 44 (0x2c), region = 40 }
  0x25   : > { %s448_s25 = sshll.u32 %s810_s19, 3 }
  0x26   : > { %s745_s10 = scalar_lea.vmem %s789_s3, %s448_s25  ;;  %s750_s13 = scalar_lea.vmem %s790_s4, %s448_s25 }
  0x29   : > { %vm248_vm0 = vcmask 0   ;;  %v630_v0 = vmov 0.0  }
  0x2a   : > { %249 = vst.msk [vmem:[#allocation2] sm:$0x1] %vm248_vm0, %v630_v0 }
  0x2b   : > { %250 = vst.msk [vmem:[#allocation3] sm:$0x1] %vm248_vm0, %v630_v0 }
  0x2c PF: > { %v251_v1 = vld [vmem:[%s206_s8] sm:$0xff]  ;;  %v252_v2 = vld [vmem:[%s206_s8 + $0x8] sm:$0xff]  ;;  %v253_v3 = vld [vmem:[%s206_s8 + $0x10] sm:$0xff]  ;;  %vm270_vm1 = vcmask 0   ;;  %p451_p2 = scmp.ne.s32.totalorder %s612_s18, 1 }
  0x2d   : > { %v256_v4 = vadd.f32 %v252_v2, %v251_v1  ;;  %v273_v5 = vmul.f32 %v251_v1, %v251_v1  ;;  %v274_v6 = vmul.f32 %v252_v2, %v252_v2  ;;  %v254_v7 = vld [vmem:[%s206_s8 + $0x18] sm:$0xff]  ;;  %v275_v9 = vmul.f32 %v253_v3, %v253_v3 }
  0x2e   : > { %v276_v12 = vmul.f32 %v254_v7, %v254_v7 }
  0x2f   : > { %v257_v8 = vadd.f32 %v256_v4, %v253_v3  ;;  %v277_v10 = vadd.f32 %v274_v6, %v273_v5 }
  0x31   : > { %v258_v11 = vadd.f32 %v257_v8, %v254_v7  ;;  %v278_v13 = vadd.f32 %v277_v10, %v275_v9  ;;  %v255_v29 = vld [vmem:[#allocation2] sm:$0x1] }
  0x32   : > { %v272_v32 = vld [vmem:[#allocation3] sm:$0x1] }
  0x33   : > { %259 = vadd.xlane.f32.xlu0 %v258_v11  ;;  %v279_v14 = vadd.f32 %v278_v13, %v276_v12 }
  0x3b   : > { %280 = vadd.xlane.f32.xlu0 %v279_v14 }
  0xa6   : > { %v260_v15 = vpop.xlane.xlu0 %259 }
  0xa7   : > { %v261_v16 = vrot.slane %v260_v15, 4 }
  0xa9   : > { %v262_v17 = vadd.f32 %v261_v16, %v260_v15 }
  0xab   : > { %v263_v18 = vrot.slane %v262_v17, 2 }
  0xad   : > { %v264_v19 = vadd.f32 %v263_v18, %v262_v17 }
  0xae   : > { %v281_v20 = vpop.xlane.xlu0 %280 }
  0xaf   : > { %v282_v21 = vrot.slane %v281_v20, 4  ;;  %v265_v22 = vrot.slane %v264_v19, 1 }
  0xb1   : > { %v283_v23 = vadd.f32 %v282_v21, %v281_v20  ;;  %v266_v24 = vadd.f32 %v265_v22, %v264_v19 }
  0xb3   : > { %v284_v25 = vrot.slane %v283_v23, 2  ;;  %454 = vpush %v266_v24 }
  0xb5   : > { %v285_v26 = vadd.f32 %v284_v25, %v283_v23 }
  0xb7   : > { %v286_v27 = vrot.slane %v285_v26, 1 }
  0xb9   : > { %v287_v28 = vadd.f32 %v286_v27, %v285_v26 }
  0xbb   : > { %456 = vpush %v287_v28 }
  0xe4   : > { %s455_s19 = spop %454 }
  0xe5   : > { %v268_v30 = vstv %s455_s19 }
  0xe6   : > { %v269_v31 = vadd.f32 %v268_v30, %v255_v29 }
  0xe8   : > { %271 = vst.msk [vmem:[#allocation2] sm:$0x1] %vm270_vm1, %v269_v31 }
  0xec   : > { %s457_s29 = spop %456  ;;  %295 = sbr.rel (%p451_p2) target bundleno = 283 (0x11b), region = 44 }
  0xed   : > { %v289_v33 = vstv %s457_s29 }
  0xee   : > { %v290_v34 = vadd.f32 %v289_v33, %v272_v32 }
  0xf0   : > { %291 = vst.msk [vmem:[#allocation3] sm:$0x1] %vm270_vm1, %v290_v34 }
  0xf1   : > { %v296_v35 = vld [vmem:[#allocation2] sm:$0x1]  ;;  %vm325_vm5 = vcmask 7168  }
  0xf2   : > { %v297_v37 = vmul.f32 0.00012207031, %v296_v35  ;;  %v314_v50 = vld [vmem:[%s787_s1] sm:$0xff] }
  0xf3   : > { %v319_v54 = vld [vmem:[%s788_s2] sm:$0xff] }
  0xf4   : > { %v300_v39 = vmul.f32 %v297_v37, %v297_v37  ;;  %v321_v52 = vperm.slane %v297_v37, 0 }
  0xf7   : > { %v298_v36 = vld [vmem:[#allocation3] sm:$0x1] }
  0xf8   : > { %v299_v38 = vmul.f32 0.00012207031, %v298_v36 }
  0xfa   : > { %v301_v40 = vsub.f32 %v299_v38, %v300_v39 }
  0xfc   : > { %v302_v41 = vmax.f32 %v301_v40, 0.0 }
  0xfe   : > { %v303_v42 = vadd.f32 1e-05, %v302_v41 }
 0x100   : > { %530 = vrsqrt.f32 %v303_v42  ;;  %vm310_vm2 = vweird.f32 %v303_v42 }
 0x106   : > { %v531_v43 = vpop.eup %530 }
 0x107   : > { %v305_v44 = vmul.f32 %v531_v43, %v303_v42  ;;  %vm311_vm3 = vweird.f32 %v531_v43 }
 0x108   : > { %vm312_vm4 = vmor %vm310_vm2, %vm311_vm3 }
 0x109   : > { %v306_v45 = vmul.f32 %v531_v43, %v305_v44 }
 0x10b   : > { %v307_v46 = vmul.f32 0.5, %v306_v45 }
 0x10d   : > { %v308_v47 = vsub.f32 1.5, %v307_v46 }
 0x10f   : > { %v309_v48 = vmul.f32 %v531_v43, %v308_v47 }
 0x111   : > { %v313_v49 = vsel %vm312_vm4, %v531_v43, %v309_v48 }
 0x112   : > { %v316_v51 = vperm.slane %v313_v49, 0 }
 0x114   : > { %v318_v53 = vmul.f32 %v316_v51, %v314_v50 }
 0x116   : > { %326 = vst.msk [vmem:[%s745_s10] sm:$0xff] %vm325_vm5, %v318_v53  ;;  %v323_v55 = vmul.f32 %v321_v52, %v318_v53 }
 0x118   : > { %v324_v56 = vsub.f32 %v319_v54, %v323_v55 }
 0x11a   : > { %327 = vst.msk [vmem:[%s750_s13] sm:$0xff] %vm325_vm5, %v324_v56 }
 0x11b PF: > { %s18_s22 = sadd.s32 1, %s628_s22   ;;  %s795_s27 = sld [smem:[#allocation7_spill]] }
 0x11c   : > { %p15_p3 = scmp.ge.s32.totalorder %s18_s22, 6   ;;  %s796_s15 = smov %s604_s16 }
 0x11d   : > { %s797_s16 = smov %s608_s17  ;;  %s798_s17 = smov %s723_s9 }
 0x11e   : > { %s799_s18 = smov %s620_s20  ;;  %s800_s19 = smov %s624_s21 }
 0x11f   : > { %s801_s20 = smov %s804_s24  ;;  %17 = sbr.rel (!%p15_p3) target bundleno = 5 (0x5), region = 92 }
 0x121   : > { %s802_s21 = smov %s795_s27 }
 0x124   :  { %361 = vsyncpa [#allocation5], 1 }
 0x125   :  { %363 = vsyncpa [#allocation5 + $0x1], 1 }

</bundles_post_ra>
